<compile_context>
chip_gen: v6e
topology: v6e:2x2x1
jax: 0.10.0
libtpu: 0.0.40
codegen_flags: <defaults>
</compile_context>

<pallas_src>
import math
import numpy as np
import jax
import jax.numpy as jnp
from jax.experimental import pallas as pl
from jax.experimental.pallas import tpu as pltpu


_MAX_UNROLL = 64  # cap TB so the in-kernel relayout unroll stays small (M,N stay MXU-sized)


def bilinear_factor(size):
    """1-D separable factor of the bilinear kernel (kernel2d = outer(u, u))."""
    factor = (size + 1) // 2
    if size % 2 == 1:
        center = factor - 1
    else:
        center = factor - 0.5
    i = np.arange(size)
    return 1.0 - np.abs(i - center) / factor


def bilinear_kernel(size, normalize=False):
    """Same as the reference numpy helper (2-D kernel)."""
    u = bilinear_factor(size)
    kernel = np.outer(u, u)
    if normalize:
        kernel = kernel / kernel.sum()
    return kernel


def _default_vmem_limit():
    """Generation-aware VMEM request (v5e/v6e: 128 MiB physical, v7x: 64 MiB)."""
    cap = 64 * 1024 * 1024  # conservative fallback == v7x physical
    try:
        info = pltpu.get_tpu_info()
        cap = int(getattr(info, "vmem_capacity_bytes", cap))
    except Exception:
        pass
    # Single headroom factor below physical (do not stack further factors on top).
    return int(cap * 0.85)


def _resample_kernel(x_ref, ah_ref, awt_ref, o_ref, rhs_ref):
    # x_ref:   (TB*H, W)      input rows of the batch tile (batch folded into M)
    # ah_ref:  (Hout, H)      strided row-resampling matrix
    # awt_ref: (W, Wp)        strided col-resampling matrix (transposed, maybe lane-padded)
    # o_ref:   (TB, Hout, Wp) batch-major output block
    # rhs_ref: (H, TB*Wp)     VMEM scratch for the batch-in-cols intermediate
    tb, hout, wp = o_ref.shape
    h = ah_ref.shape[1]
    cdt = awt_ref.dtype

    x = x_ref[...]
    if x.dtype != cdt:
        x = x.astype(cdt)

    # Width pass: one matmul, M = TB*H, K = W, N = Wp (f32 accumulation).
    t = jnp.dot(x, awt_ref[...], preferred_element_type=jnp.float32)      # (TB*H, Wp)
    t = t.astype(cdt)

    # Inherent batch-rows -> batch-cols relayout of the (downsampled) intermediate so
    # the height pass is a single rank-2 matmul instead of TB tiny batched matmuls.
    if tb > 1:
        for b in range(tb):
            rhs_ref[:, b * wp:(b + 1) * wp] = t[b * h:(b + 1) * h, :]
        rhs = rhs_ref[...]                                                 # (H, TB*Wp)
    else:
        rhs = t                                                            # (H, Wp)

    # Height pass: one matmul, M = Hout, K = H, N = TB*Wp (f32 accumulation).
    y = jnp.dot(ah_ref[...], rhs, preferred_element_type=jnp.float32)      # (Hout, TB*Wp)

    # Scatter back to the batch-major output block (VMEM-local; avoids a wrapper-side
    # HBM transpose pass over the output).
    for b in range(tb):
        o_ref[b, :, :] = y[:, b * wp:(b + 1) * wp].astype(o_ref.dtype)


class Resampler:
    """Spatial resampling with a bilinear kernel (strided conv2d), Pallas TPU."""

    def __init__(self, rate, odd, normalize, use_bf16=True):
        self.rate = rate
        ksize = rate * 2
        if odd:
            ksize -= 1
        self.ksize = ksize
        self.normalize = normalize

        # Deterministic "parameter" (matches nn.Parameter weight of shape (1,1,k,k)).
        self.weight = jnp.asarray(
            bilinear_kernel(ksize, normalize), dtype=jnp.float32)[None, None]

        # Separable factors; the normalization (sum of the 2-D kernel) is folded
        # into the column factor so that outer(u_row, u_col) == weight exactly.
        u = bilinear_factor(ksize)
        s = float(np.outer(u, u).sum()) if normalize else 1.0
        self._u_row = u.astype(np.float32)
        self._u_col = (u / s).astype(np.float32)

        # bf16 MXU operands (f32 accumulation) by default; f32 path for precision-
        # sensitive callers (avoids the double rounding of the intermediate).
        self._adtype = jnp.bfloat16 if use_bf16 else jnp.float32

        self._cache = {}
        self._vmem_limit = _default_vmem_limit()

    # ---- host-side helpers -------------------------------------------------

    def _matrices(self, H, W):
        """Strided resampling matrices + (conditionally) padded output width."""
        key = (H, W)
        if key not in self._cache:
            r, k = self.rate, self.ksize
            Hout = (H - k) // r + 1
            Wout = (W - k) // r + 1
            assert Hout > 0 and Wout > 0, "input spatial size smaller than kernel"

            # Conditional lane padding: only pad to a multiple of 128 when the pad
            # fraction is small (<= 12.5%); tiny Wout stays unpadded (masked stores)
            # so HBM writeback is not inflated and no wrapper slice pass is needed.
            wp_pad = ((Wout + 127) // 128) * 128
            Wp = wp_pad if (wp_pad - Wout) * 8 <= Wout else Wout

            A_h = np.zeros((Hout, H), dtype=np.float32)
            A_w = np.zeros((Wp, W), dtype=np.float32)
            taps = np.arange(k)[None, :]
            rows_h = np.arange(Hout)[:, None]
            rows_w = np.arange(Wout)[:, None]
            A_h[rows_h, rows_h * r + taps] = self._u_row[None, :]
            A_w[rows_w, rows_w * r + taps] = self._u_col[None, :]

            self._cache[key] = (
                jnp.asarray(A_h, dtype=self._adtype),       # (Hout, H)
                jnp.asarray(A_w.T, dtype=self._adtype),     # (W, Wp)
                Hout, Wout, Wp)
        return self._cache[key]

    def _pick_batch_tile(self, B, H, W, Hout, Wp, in_bytes, out_bytes):
        """Largest batch tile that fits the VMEM budget (tight accounting)."""
        a_bytes = 2 if self._adtype == jnp.bfloat16 else 4
        budget = max(self._vmem_limit - (2 << 20), 1 << 20)   # small compiler-scratch margin
        # Double-buffered pipeline buffers: input block + output block.
        # Single compiler-managed temporaries: cast copy of x, width-pass result (f32),
        # relayouted rhs scratch, height-pass result (f32).
        per_img = (2 * H * W * in_bytes
                   + 2 * Hout * Wp * out_bytes
                   + H * W * (a_bytes if in_bytes != a_bytes else 0)
                   + H * Wp * 4
                   + H * Wp * a_bytes
                   + Hout * Wp * 4)
        fixed = 2 * (Hout * H + W * Wp) * a_bytes             # A matrices (worst case 2 bufs)
        tb = int((budget - fixed) // per_img)
        tb = max(1, min(tb, B, _MAX_UNROLL))
        if tb < B:
            # Keep the (TB*H, W) input block sublane-aligned: TB*H % 8 == 0.
            r = 8 // math.gcd(H, 8)
            tb = max(r, (tb // r) * r)
        # NOTE: no forced >=2-step split -- on v5e/v6e (1 TC) it is pure overhead and
        # for tiny work on v7x a single step minimizes fixed costs; large B naturally
        # yields multiple "parallel" steps for v7x megacore.
        return tb

    # ---- forward -----------------------------------------------------------

    def resample(self, x):
        # x: (B, 1, H, W) -> (B, 1, Hout, Wout); single-channel bilinear conv, stride=rate.
        B, C1, H, W = x.shape
        assert C1 == 1
        assert H >= self.ksize and W >= self.ksize, "input smaller than resampling kernel"

        A_h, A_wT, Hout, Wout, Wp = self._matrices(H, W)
        in_bytes = jnp.dtype(x.dtype).itemsize
        out_bytes = in_bytes
        a_bytes = 2 if self._adtype == jnp.bfloat16 else 4

        TB = self._pick_batch_tile(B, H, W, Hout, Wp, in_bytes, out_bytes)
        if TB >= B:
            TB, Bp = B, B
        else:
            Bp = ((B + TB - 1) // TB) * TB        # pad batch to a multiple of TB
        steps = Bp // TB

        imgs = x.reshape(B, H, W)
        if Bp > B:
            imgs = jnp.concatenate(
                [imgs, jnp.zeros((Bp - B, H, W), dtype=x.dtype)], axis=0)
        rows = imgs.reshape(Bp * H, W)            # free view: collapse adjacent leading dims

        # Constant-across-grid A matrices: single-buffer when the grid has >1 step.
        def _const_spec(shape):
            spec = pl.BlockSpec(shape, lambda i: (0, 0))
            if steps > 1:
                try:
                    spec = pl.BlockSpec(shape, lambda i: (0, 0),
                                        pipeline_mode=pl.Buffered(1))
                except (TypeError, AttributeError, ValueError):
                    pass
            return spec

        flops = 2.0 * B * H * Wout * (W + Hout)
        bytes_accessed = (B * H * W * in_bytes + B * Hout * Wout * out_bytes
                          + (Hout * H + W * Wp) * a_bytes)

        out = pl.pallas_call(
            _resample_kernel,
            out_shape=jax.ShapeDtypeStruct((Bp, Hout, Wp), x.dtype),
            grid_spec=pltpu.PrefetchScalarGridSpec(
                num_scalar_prefetch=0,
                grid=(steps,),
                in_specs=[
                    pl.BlockSpec((TB * H, W), lambda i: (i, 0)),
                    _const_spec((Hout, H)),
                    _const_spec((W, Wp)),
                ],
                out_specs=pl.BlockSpec((TB, Hout, Wp), lambda i: (i, 0, 0)),
                scratch_shapes=[pltpu.VMEM((H, TB * Wp), self._adtype)],
            ),
            compiler_params=pltpu.CompilerParams(
                dimension_semantics=("parallel",),
                vmem_limit_bytes=self._vmem_limit,
            ),
            cost_estimate=pl.CostEstimate(
                flops=int(flops), transcendentals=0,
                bytes_accessed=int(bytes_accessed)),
        )(rows, A_h, A_wT)

        if Bp > B or Wp > Wout:
            out = out[:B, :, :Wout]
        return out.reshape(B, 1, Hout, Wout)

    def __call__(self, x):
        # Mirrors Resampler.forward (NCHW).
        N, C, H, W = x.shape
        if C == 1:
            return self.resample(x)
        else:
            # In PyTorch, conv2d after transpose_(0,1) requires batch == 1 here;
            # with N == 1 the transpose is a pure reshape (no HBM transpose needed).
            assert N == 1, "Resampler with C > 1 requires batch size 1 (as in PyTorch)"
            y = self.resample(x.reshape(C, 1, H, W))
            return y.reshape(1, C, y.shape[-2], y.shape[-1])


if __name__ == "__main__":
    rate, odd, normalize = 2, True, True            # ksize = 3, normalized kernel
    mod = Resampler(rate, odd, normalize)

    key = jax.random.PRNGKey(0)
    x = jax.random.normal(key, (1, 4, 16, 16), dtype=jnp.float32)

    y = jax.block_until_ready(mod(x))                # (1, 4, 7, 7)

    # Pure-JAX reference: per-channel conv2d with the 2-D bilinear weight, stride=rate.
    def conv_ref(xx):
        N, C, H, W = xx.shape
        r = jax.lax.conv_general_dilated(
            xx.reshape(N * C, 1, H, W), mod.weight,
            window_strides=(rate, rate), padding="VALID",
            dimension_numbers=("NCHW", "OIHW", "NCHW"))
        return r.reshape(N, C, r.shape[-2], r.shape[-1])

    ref = conv_ref(x)
    assert y.shape == ref.shape, (y.shape, ref.shape)
    assert jnp.allclose(y, ref, rtol=2e-2, atol=2e-2), float(jnp.max(jnp.abs(y - ref)))

    # Also exercise the C == 1 branch of forward().
    x1 = jax.random.normal(jax.random.PRNGKey(1), (2, 1, 16, 16), dtype=jnp.float32)
    y1 = jax.block_until_ready(mod(x1))
    ref1 = conv_ref(x1)
    assert y1.shape == ref1.shape == (2, 1, 7, 7), (y1.shape, ref1.shape)
    assert jnp.allclose(y1, ref1, rtol=2e-2, atol=2e-2), float(jnp.max(jnp.abs(y1 - ref1)))

    print("KERNEL_OK")
</pallas_src>

<mosaic_0001>
module attributes {stable_mosaic.version = 11 : i64} {
  func.func @_resample_kernel(%arg0: i32, %arg1: memref<64x16xf32, #tpu.memory_space<vmem>>, %arg2: memref<7x16xbf16, #tpu.memory_space<vmem>>, %arg3: memref<16x7xbf16, #tpu.memory_space<vmem>>, %arg4: memref<4x7x7xf32, #tpu.memory_space<vmem>>, %arg5: memref<16x28xbf16, #tpu.memory_space<vmem>>) attributes {dimension_semantics = [#tpu.dimension_semantics<parallel>], iteration_bounds = array<i64: 1>, scalar_prefetch = 0 : i64, scratch_operands = 1 : i64, tpu.core_type = #tpu.core_type<tc>, window_params = [{transform_indices = @transform_0, window_bounds = array<i64: 64, 16>}, {pipeline_mode = #tpu.pipeline_mode<synchronous>, transform_indices = @transform_1, window_bounds = array<i64: 7, 16>}, {pipeline_mode = #tpu.pipeline_mode<synchronous>, transform_indices = @transform_2, window_bounds = array<i64: 16, 7>}, {transform_indices = @transform_3, window_bounds = array<i64: 4, 7, 7>}]} {
    %c0 = arith.constant 0 : index
    %c0_0 = arith.constant 0 : index
    %0 = vector.load %arg1[%c0, %c0_0] : memref<64x16xf32, #tpu.memory_space<vmem>>, vector<64x16xf32>
    %1 = arith.truncf %0 : vector<64x16xf32> to vector<64x16xbf16>
    %c0_1 = arith.constant 0 : index
    %c0_2 = arith.constant 0 : index
    %2 = vector.load %arg3[%c0_1, %c0_2] : memref<16x7xbf16, #tpu.memory_space<vmem>>, vector<16x7xbf16>
    %cst = arith.constant dense<0.000000e+00> : vector<64x7xf32>
    %3 = tpu.matmul %1, %2, %cst {dimension_numbers = #tpu.dot_dimension_numbers<[1], [0], [0], [1], [0, 0, 1, 1], [], []>} : vector<64x16xbf16>, vector<16x7xbf16>, vector<64x7xf32> -> vector<64x7xf32>
    %4 = arith.truncf %3 : vector<64x7xf32> to vector<64x7xbf16>
    %5 = vector.extract_strided_slice %4 {offsets = [0, 0], sizes = [16, 7], strides = [1, 1]} : vector<64x7xbf16> to vector<16x7xbf16>
    %c0_3 = arith.constant 0 : index
    %c0_4 = arith.constant 0 : index
    %6 = vector.load %arg5[%c0_3, %c0_4] : memref<16x28xbf16, #tpu.memory_space<vmem>>, vector<16x7xbf16>
    tpu.vector_store %arg5[%c0_3, %c0_4], %5 {strides = array<i32>} : memref<16x28xbf16, #tpu.memory_space<vmem>>, vector<16x7xbf16>,
    %7 = vector.extract_strided_slice %4 {offsets = [16, 0], sizes = [16, 7], strides = [1, 1]} : vector<64x7xbf16> to vector<16x7xbf16>
    %c0_5 = arith.constant 0 : index
    %c7 = arith.constant 7 : index
    %8 = vector.load %arg5[%c0_5, %c7] : memref<16x28xbf16, #tpu.memory_space<vmem>>, vector<16x7xbf16>
    tpu.vector_store %arg5[%c0_5, %c7], %7 {strides = array<i32>} : memref<16x28xbf16, #tpu.memory_space<vmem>>, vector<16x7xbf16>,
    %9 = vector.extract_strided_slice %4 {offsets = [32, 0], sizes = [16, 7], strides = [1, 1]} : vector<64x7xbf16> to vector<16x7xbf16>
    %c0_6 = arith.constant 0 : index
    %c14 = arith.constant 14 : index
    %10 = vector.load %arg5[%c0_6, %c14] : memref<16x28xbf16, #tpu.memory_space<vmem>>, vector<16x7xbf16>
    tpu.vector_store %arg5[%c0_6, %c14], %9 {strides = array<i32>} : memref<16x28xbf16, #tpu.memory_space<vmem>>, vector<16x7xbf16>,
    %11 = vector.extract_strided_slice %4 {offsets = [48, 0], sizes = [16, 7], strides = [1, 1]} : vector<64x7xbf16> to vector<16x7xbf16>
    %c0_7 = arith.constant 0 : index
    %c21 = arith.constant 21 : index
    %12 = vector.load %arg5[%c0_7, %c21] : memref<16x28xbf16, #tpu.memory_space<vmem>>, vector<16x7xbf16>
    tpu.vector_store %arg5[%c0_7, %c21], %11 {strides = array<i32>} : memref<16x28xbf16, #tpu.memory_space<vmem>>, vector<16x7xbf16>,
    %c0_8 = arith.constant 0 : index
    %c0_9 = arith.constant 0 : index
    %13 = vector.load %arg5[%c0_8, %c0_9] : memref<16x28xbf16, #tpu.memory_space<vmem>>, vector<16x28xbf16>
    %c0_10 = arith.constant 0 : index
    %c0_11 = arith.constant 0 : index
    %14 = vector.load %arg2[%c0_10, %c0_11] : memref<7x16xbf16, #tpu.memory_space<vmem>>, vector<7x16xbf16>
    %cst_12 = arith.constant dense<0.000000e+00> : vector<7x28xf32>
    %15 = tpu.matmul %14, %13, %cst_12 {dimension_numbers = #tpu.dot_dimension_numbers<[1], [0], [0], [1], [0, 0, 1, 1], [], []>} : vector<7x16xbf16>, vector<16x28xbf16>, vector<7x28xf32> -> vector<7x28xf32>
    %16 = vector.extract_strided_slice %15 {offsets = [0, 0], sizes = [7, 7], strides = [1, 1]} : vector<7x28xf32> to vector<7x7xf32>
    %c0_13 = arith.constant 0 : index
    %c0_14 = arith.constant 0 : index
    %c0_15 = arith.constant 0 : index
    %17 = vector.load %arg4[%c0_13, %c0_14, %c0_15] : memref<4x7x7xf32, #tpu.memory_space<vmem>>, vector<1x7x7xf32>
    %18 = vector.shape_cast %17 : vector<1x7x7xf32> to vector<7x7xf32>
    %19 = vector.shape_cast %16 : vector<7x7xf32> to vector<1x7x7xf32>
    tpu.vector_store %arg4[%c0_13, %c0_14, %c0_15], %19 {strides = array<i32>} : memref<4x7x7xf32, #tpu.memory_space<vmem>>, vector<1x7x7xf32>,
    %20 = vector.extract_strided_slice %15 {offsets = [0, 7], sizes = [7, 7], strides = [1, 1]} : vector<7x28xf32> to vector<7x7xf32>
    %c1 = arith.constant 1 : index
    %c0_16 = arith.constant 0 : index
    %c0_17 = arith.constant 0 : index
    %21 = vector.load %arg4[%c1, %c0_16, %c0_17] : memref<4x7x7xf32, #tpu.memory_space<vmem>>, vector<1x7x7xf32>
    %22 = vector.shape_cast %21 : vector<1x7x7xf32> to vector<7x7xf32>
    %23 = vector.shape_cast %20 : vector<7x7xf32> to vector<1x7x7xf32>
    tpu.vector_store %arg4[%c1, %c0_16, %c0_17], %23 {strides = array<i32>} : memref<4x7x7xf32, #tpu.memory_space<vmem>>, vector<1x7x7xf32>,
    %24 = vector.extract_strided_slice %15 {offsets = [0, 14], sizes = [7, 7], strides = [1, 1]} : vector<7x28xf32> to vector<7x7xf32>
    %c2 = arith.constant 2 : index
    %c0_18 = arith.constant 0 : index
    %c0_19 = arith.constant 0 : index
    %25 = vector.load %arg4[%c2, %c0_18, %c0_19] : memref<4x7x7xf32, #tpu.memory_space<vmem>>, vector<1x7x7xf32>
    %26 = vector.shape_cast %25 : vector<1x7x7xf32> to vector<7x7xf32>
    %27 = vector.shape_cast %24 : vector<7x7xf32> to vector<1x7x7xf32>
    tpu.vector_store %arg4[%c2, %c0_18, %c0_19], %27 {strides = array<i32>} : memref<4x7x7xf32, #tpu.memory_space<vmem>>, vector<1x7x7xf32>,
    %28 = vector.extract_strided_slice %15 {offsets = [0, 21], sizes = [7, 7], strides = [1, 1]} : vector<7x28xf32> to vector<7x7xf32>
    %c3 = arith.constant 3 : index
    %c0_20 = arith.constant 0 : index
    %c0_21 = arith.constant 0 : index
    %29 = vector.load %arg4[%c3, %c0_20, %c0_21] : memref<4x7x7xf32, #tpu.memory_space<vmem>>, vector<1x7x7xf32>
    %30 = vector.shape_cast %29 : vector<1x7x7xf32> to vector<7x7xf32>
    %31 = vector.shape_cast %28 : vector<7x7xf32> to vector<1x7x7xf32>
    tpu.vector_store %arg4[%c3, %c0_20, %c0_21], %31 {strides = array<i32>} : memref<4x7x7xf32, #tpu.memory_space<vmem>>, vector<1x7x7xf32>,
    return
  }
  func.func @transform_0(%arg0: i32) -> (i32, i32) {
    %c0_i32 = arith.constant 0 : i32
    %c0_i32_0 = arith.constant 0 : i32
    return %arg0, %c0_i32 : i32, i32
  }
  func.func @transform_1(%arg0: i32) -> (i32, i32) {
    %c0_i32 = arith.constant 0 : i32
    %c0_i32_0 = arith.constant 0 : i32
    %c0_i32_1 = arith.constant 0 : i32
    return %c0_i32, %c0_i32_0 : i32, i32
  }
  func.func @transform_2(%arg0: i32) -> (i32, i32) {
    %c0_i32 = arith.constant 0 : i32
    %c0_i32_0 = arith.constant 0 : i32
    %c0_i32_1 = arith.constant 0 : i32
    return %c0_i32, %c0_i32_0 : i32, i32
  }
  func.func @transform_3(%arg0: i32) -> (i32, i32, i32) {
    %c0_i32 = arith.constant 0 : i32
    %c0_i32_0 = arith.constant 0 : i32
    %c0_i32_1 = arith.constant 0 : i32
    return %arg0, %c0_i32, %c0_i32_0 : i32, i32, i32
  }
}

</mosaic_0001>

<bundles_post_ra>
// kernel: tpu_custom_call.1
= control target key start
LH: loop header
LB: loop body
LE: loop exit
PB: predicated region body
PF: predicated region fallthrough
CT: control target
= control target key end

     0   :  { %vm35_vm0 = vcmask 130048   ;;  %vm124_vm1 = vcmask 52224   ;;  %s302_s29 = smov 7   ;;  %v303_v23 = vmov 0.0   ;;  %s305_s30 = smov 14   ;;  %vm306_vm2 = vmmov 0   ;;  %s381_s2 = inlined_call_operand.vmem [shape: bf16[16,7], index: 2, kind: input, shape index: {}]   ;;  %s382_s0 = inlined_call_operand.vmem [shape: f32[64,16], index: 0, kind: input, shape index: {}]   ;;  %s383_s1 = inlined_call_operand.vmem [shape: bf16[7,16], index: 1, kind: input, shape index: {}]   ;;  %s384_s3 = inlined_call_operand.vmem [shape: f32[4,7,7], index: 3, kind: output, shape index: {}]  }
   0x1   :  { %v300_v0 = vld [vmem:[%s381_s2] sm:$0xff]   ;;  %v16_v2 = vld [vmem:[%s382_s0 + $0x8] sm:$0xff]  ;;  %v17_v3 = vld [vmem:[%s382_s0 + $0x10] sm:$0xff]  ;;  %286 = vmatprep.subr.bf16.mxu1 %v303_v23  ;;  %288 = vmatprep.mubr.msk.bf16.mxu1 %vm306_vm2, %v303_v23  ;;  %vm138_vm3 = vcmask 109624   ;;  %vm152_vm4 = vcmask 167024   ;;  %vm166_vm5 = vcmask 224424  }
   0x2   :  { %v15_v1 = vld [vmem:[%s382_s0] sm:$0xff]  ;;  %276 = vmatprep.subr.bf16.mxu0 %v300_v0  ;;  %v18_v5 = vld [vmem:[%s382_s0 + $0x18] sm:$0xff]  ;;  %v20_v7 = vld [vmem:[%s382_s0 + $0x28] sm:$0xff]  ;;  %vm221_vm6 = vcmask 55296   ;;  %s307_s8 = smov 114   ;;  %s308_s9 = smov 121  }
   0x3   :  { %v23_v4 = vpack.c.bf16 %v16_v2, %v15_v1  ;;  %v19_v6 = vld [vmem:[%s382_s0 + $0x20] sm:$0xff]  ;;  %277 = vmatpush3.bf16.msra.mxu0 %v300_v0  ;;  %v24_v8 = vpack.c.bf16 %v18_v5, %v17_v3  ;;  %v21_v10 = vld [vmem:[%s382_s0 + $0x30] sm:$0xff]  ;;  %v22_v11 = vld [vmem:[%s382_s0 + $0x38] sm:$0xff]  ;;  %s304_s0 = smov 21   ;;  %s309_s10 = smov 107  }
   0x4   :  { %v25_v9 = vpack.c.bf16 %v20_v7, %v19_v6  ;;  %v26_v12 = vpack.c.bf16 %v22_v11, %v21_v10  ;;  %v171_v37 = vld [vmem:[%s383_s1] sm:$0xf] }
   0x5   :  { %278 = vmatprep.mubr.msk.bf16.mxu0 %vm35_vm0, %v23_v4 }
   0x6   :  { %279 = vmatmul.mubr.msk.bf16.vlgmr.msra.gmra.mxu0 %vm35_vm0, %v24_v8 }
   0x7   :  { %282 = vmatprep.mubr.msk.bf16.mxu0 %vm35_vm0, %v25_v9 }
   0xe   :  { %283 = vmatmul.mubr.msk.bf16.gmra.mxu0 %vm35_vm0, %v26_v12 }
  0xc6   :  { %v280_v13 = vpop.f32.mrf.mxu0 }
  0xc7   :  { %v263_v14 = vpack.c.bf16 %v280_v13, %v280_v13 }
  0xc8   :  { %v82_v15 = vpop.f32.mrf.mxu0 }
  0xc9   :  { %v261_v16 = vpack.c.bf16 %v82_v15, %v82_v15  ;;  %132 = vrot.lane.b32.xlu0 %v263_v14, %s302_s29 }
  0xca   :  { %v281_v17 = vpop.f32.mrf.mxu0 }
  0xcb   :  { %125 = vst.msk [vmem:[#allocation2] sm:$0xf] %vm124_vm1, %v261_v16  ;;  %v264_v18 = vpack.c.bf16 %v281_v17, %v281_v17 }
  0xcc   :  { %v85_v19 = vpop.f32.mrf.mxu0 }
  0xcd   :  { %v262_v20 = vpack.c.bf16 %v85_v19, %v85_v19  ;;  %134 = vrot.lane.b32.xlu0 %v264_v18, %s302_s29 }
  0xce   :  { %v284_v21 = vpop.f32.mrf.mxu0 }
  0xcf   :  { %126 = vst.msk [vmem:[#allocation2 + $0x4] sm:$0xf] %vm124_vm1, %v262_v20  ;;  %v267_v22 = vpack.c.bf16 %v284_v21, %v284_v21 }
  0xd0   :  { %v98_v24 = vpop.f32.mrf.mxu0 }
  0xd1   :  { %v265_v25 = vpack.c.bf16 %v98_v24, %v98_v24  ;;  %160 = vrot.lane.b32.xlu0 %v267_v22, %s304_s0 }
  0xd2   :  { %v285_v26 = vpop.f32.mrf.mxu0 }
  0xd3   :  { %146 = vrot.lane.b32.xlu1 %v265_v25, %s305_s30  ;;  %v268_v29 = vpack.c.bf16 %v285_v26, %v285_v26 }
  0xd4   :  { %v101_v27 = vpop.f32.mrf.mxu0 }
  0xd5   :  { %v266_v28 = vpack.c.bf16 %v101_v27, %v101_v27 }
  0xd7   :  { %148 = vrot.lane.b32.xlu1 %v266_v28, %s305_s30 }
  0xdb   :  { %162 = vrot.lane.b32.xlu1 %v268_v29, %s304_s0 }
 0x13b   :  { %v133_v30 = vpop.permute.xlu0 %132 }
 0x13c   :  { %139 = vst.msk [vmem:[#allocation2] sm:$0xf] %vm138_vm3, %v133_v30 }
 0x13f   :  { %v135_v31 = vpop.permute.xlu0 %134 }
 0x140   :  { %140 = vst.msk [vmem:[#allocation2 + $0x4] sm:$0xf] %vm138_vm3, %v135_v31 }
 0x143   :  { %v161_v33 = vpop.permute.xlu0 %160 }
 0x145   :  { %v147_v32 = vpop.permute.xlu1 %146 }
 0x146   :  { %153 = vst.msk [vmem:[#allocation2] sm:$0xf] %vm152_vm4, %v147_v32 }
 0x147   :  { %167 = vst.msk [vmem:[#allocation2] sm:$0xf] %vm166_vm5, %v161_v33 }
 0x149   :  { %v149_v34 = vpop.permute.xlu1 %148 }
 0x14a   :  { %154 = vst.msk [vmem:[#allocation2 + $0x4] sm:$0xf] %vm152_vm4, %v149_v34 }
 0x14d   :  { %v163_v35 = vpop.permute.xlu1 %162 }
 0x14e   :  { %168 = vst.msk [vmem:[#allocation2 + $0x4] sm:$0xf] %vm166_vm5, %v163_v35 }
 0x155   :  { %v301_v36 = vld [vmem:[#allocation2] sm:$0xff]  }
 0x156   :  { %287 = vmatpush3.bf16.msra.mxu1 %v301_v36 }
 0x159   :  { %289 = vmatmul.mubr.msk.bf16.vlgmr.msra.gmra.mxu1 %vm35_vm0, %v171_v37 }
 0x219   :  { %v215_v38 = vpop.f32.mrf.mxu1 }
 0x21a   :  { %222 = vst.msk [vmem:[%s384_s3] sm:$0x7f] %vm221_vm6, %v215_v38  ;;  %229 = vrot.lane.b32.xlu1 %v215_v38, %s307_s8  ;;  %224 = vrot.lane.b32.xlu0 %v215_v38, %s308_s9 }
 0x21b   :  { %v290_v39 = vpop.f32.mrf.mxu1 }
 0x21d   :  { %v218_v40 = vpop.f32.mrf.mxu1 }
 0x21e   :  { %234 = vrot.lane.b32.xlu0 %v215_v38, %s309_s10 }
 0x21f   :  { %v291_v41 = vpop.f32.mrf.mxu1 }
 0x28c   :  { %v230_v42 = vpop.permute.xlu1 %229  ;;  %v225_v43 = vpop.permute.xlu0 %224 }
 0x28d   :  { %259 = vst.msk [vmem:[%s384_s3 + $0x10] sm:$0x7f] %vm221_vm6, %v230_v42  ;;  %258 = vst.msk [vmem:[%s384_s3 + $0x8] sm:$0x7f] %vm221_vm6, %v225_v43 }
 0x290   :  { %v235_v44 = vpop.permute.xlu0 %234 }
 0x291   :  { %260 = vst.msk [vmem:[%s384_s3 + $0x18] sm:$0x7f] %vm221_vm6, %v235_v44 }

</bundles_post_ra>
